<compile_context>
chip_gen: v7x
topology: tpu7x:2x2x1
jax: 0.10.0
libtpu: 0.0.40
codegen_flags: <defaults>
</compile_context>

<pallas_src>
import functools

import jax
import jax.numpy as jnp
from jax.experimental import pallas as pl
from jax.experimental.pallas import tpu as pltpu

D_IN = 300        # glove half-dim (conv in_channels)
D_OUT = 100       # conv out_channels
D_OUT_PAD = 128   # lane-dense padded out_channels


def _pano_kernel(x_ref, w_ref, b_ref, out_ref):
    """One grid step: TN entities, each already reduced to a single 300-d fact mean.

    x_ref   : (TN, 300)  per-entity mean fact vector (channels-last)
    w_ref   : (300, 128) 1x1-conv weight, transposed and zero-padded to 128 lanes
    b_ref   : (1, 128)   conv bias, zero-padded
    out_ref : (TN, 128)  projected output (only the first 100 lanes are meaningful)
    """
    out_ref[...] = (
        jnp.dot(x_ref[...], w_ref[...], preferred_element_type=jnp.float32)
        + b_ref[...]
    )


@functools.partial(jax.jit, static_argnames=("top_k_facts",))
def pano_entity_knowledge(detect_labels, knowledge_table, conv_w, conv_b,
                          *, top_k_facts):
    """JAX/Pallas equivalent of PanoEntityKnowledge.forward.

    detect_labels  : (B, L, V) int32, label id or -1 (maps to zero facts)
    knowledge_table: (num_labels + 1, top_k_facts, 600) f32, last row is zeros (the -1 entry)
    conv_w         : (100, 300, 1, 1) f32 (PyTorch Conv2d weight layout)
    conv_b         : (100,) f32
    returns        : (B, L, V, 100) f32
    """
    B, L, V = detect_labels.shape
    N = B * L * V
    K2 = top_k_facts * 2
    num_labels = knowledge_table.shape[0] - 1  # last row reserved for label == -1

    # ---- glue (label-level reduction + gather), plain JAX ------------------
    # Reduce the table once over the K2 fact axis (exact by linearity of the conv):
    #   mean_k(W @ fact_k + b) = W @ mean_k(fact_k) + b
    tab = knowledge_table[:, :top_k_facts, :].astype(jnp.float32)
    tab_mean = jnp.mean(tab.reshape(-1, K2, D_IN), axis=1)        # (num_labels+1, 300)

    labels = detect_labels.reshape(-1)
    idx = jnp.where(labels < 0, num_labels, labels)
    x = jnp.take(tab_mean, idx, axis=0)                           # (N, 300)

    # Tile size: large (1024) for real shapes, shrunk (multiple of 8) for tiny inputs.
    TN = 1024 if N >= 1024 else max(8, ((N + 7) // 8) * 8)
    N_pad = ((N + TN - 1) // TN) * TN
    if N_pad != N:
        x = jnp.pad(x, ((0, N_pad - N), (0, 0)))                  # zero rows -> bias only, sliced off

    # Lane-dense weights / bias: pad 100 -> 128 output channels.
    w = conv_w[:, :, 0, 0].T.astype(jnp.float32)                  # (300, 100)
    w = jnp.pad(w, ((0, 0), (0, D_OUT_PAD - D_OUT)))              # (300, 128)
    b = jnp.pad(conv_b.astype(jnp.float32),
                (0, D_OUT_PAD - D_OUT)).reshape(1, D_OUT_PAD)     # (1, 128)

    # ---- Pallas hot path ---------------------------------------------------
    grid = (N_pad // TN,)
    out = pl.pallas_call(
        _pano_kernel,
        out_shape=jax.ShapeDtypeStruct((N_pad, D_OUT_PAD), jnp.float32),
        grid=grid,
        in_specs=[
            pl.BlockSpec((TN, D_IN), lambda i: (i, 0)),
            pl.BlockSpec((D_IN, D_OUT_PAD), lambda i: (0, 0)),
            pl.BlockSpec((1, D_OUT_PAD), lambda i: (0, 0)),
        ],
        out_specs=pl.BlockSpec((TN, D_OUT_PAD), lambda i: (i, 0)),
        compiler_params=pltpu.CompilerParams(
            dimension_semantics=("parallel",)),
    )(x, w, b)

    return out[:N, :D_OUT].reshape(B, L, V, D_OUT)


def _reference(detect_labels, knowledge_table, conv_w, conv_b, top_k_facts):
    """Plain-JAX reference mirroring the PyTorch op ordering (project, then mean)."""
    B, L, V = detect_labels.shape
    N = B * L * V
    K2 = top_k_facts * 2
    num_labels = knowledge_table.shape[0] - 1
    labels = detect_labels.reshape(-1)
    idx = jnp.where(labels < 0, num_labels, labels)
    facts = knowledge_table[idx][:, :top_k_facts, :].reshape(N, K2, D_IN)
    w = conv_w[:, :, 0, 0].T
    y = jnp.einsum("nkd,do->nko", facts, w) + conv_b[None, None, :]
    return jnp.mean(y, axis=1).reshape(B, L, V, D_OUT)


if __name__ == "__main__":
    key = jax.random.PRNGKey(0)
    k_tab, k_w, k_b, k_lab = jax.random.split(key, 4)

    # Small, module-consistent sizes.
    batch, max_len, views = 2, 3, 4
    top_k_facts = 4
    num_labels = 12

    # Deterministic "knowledge_fact_dict": table of (top_k, 600) glove-pair facts,
    # with an extra all-zeros row standing in for the -1 entry.
    table = 0.1 * jax.random.normal(
        k_tab, (num_labels, top_k_facts, 2 * D_IN), dtype=jnp.float32)
    table = jnp.concatenate(
        [table, jnp.zeros((1, top_k_facts, 2 * D_IN), jnp.float32)], axis=0)

    # Deterministic Conv2d(300, 100, 1x1) parameters (PyTorch weight layout).
    conv_w = 0.02 * jax.random.normal(k_w, (D_OUT, D_IN, 1, 1), dtype=jnp.float32)
    conv_b = 0.02 * jax.random.normal(k_b, (D_OUT,), dtype=jnp.float32)

    # Labels in [-1, num_labels); -1 means "no detection".
    detect_labels = jax.random.randint(
        k_lab, (batch, max_len, views), minval=-1, maxval=num_labels, dtype=jnp.int32)

    out = pano_entity_knowledge(
        detect_labels, table, conv_w, conv_b, top_k_facts=top_k_facts)
    out = jax.block_until_ready(out)

    ref = _reference(detect_labels, table, conv_w, conv_b, top_k_facts)
    assert out.shape == (batch, max_len, views, D_OUT)
    # reduce-then-project vs project-then-reduce differ only by f32 rounding order.
    assert jnp.allclose(out, ref, rtol=1e-4, atol=1e-5), "kernel mismatch vs reference"

    print("KERNEL_OK")
</pallas_src>

<mosaic_0001>
module attributes {stable_mosaic.version = 11 : i64} {
  func.func @_pano_kernel(%arg0: i32, %arg1: memref<24x300xf32, #tpu.memory_space<vmem>>, %arg2: memref<300x128xf32, #tpu.memory_space<vmem>>, %arg3: memref<1x128xf32, #tpu.memory_space<vmem>>, %arg4: memref<24x128xf32, #tpu.memory_space<vmem>>) attributes {dimension_semantics = [#tpu.dimension_semantics<parallel>], iteration_bounds = array<i64: 1>, scalar_prefetch = 0 : i64, scratch_operands = 0 : i64, tpu.core_type = #tpu.core_type<tc>, window_params = [{transform_indices = @transform_0, window_bounds = array<i64: 24, 300>}, {pipeline_mode = #tpu.pipeline_mode<synchronous>, transform_indices = @transform_1, window_bounds = array<i64: 300, 128>}, {pipeline_mode = #tpu.pipeline_mode<synchronous>, transform_indices = @transform_2, window_bounds = array<i64: 1, 128>}, {transform_indices = @transform_3, window_bounds = array<i64: 24, 128>}]} {
    %c0 = arith.constant 0 : index
    %c0_0 = arith.constant 0 : index
    %0 = vector.load %arg1[%c0, %c0_0] : memref<24x300xf32, #tpu.memory_space<vmem>>, vector<24x300xf32>
    %c0_1 = arith.constant 0 : index
    %c0_2 = arith.constant 0 : index
    %1 = vector.load %arg2[%c0_1, %c0_2] : memref<300x128xf32, #tpu.memory_space<vmem>>, vector<300x128xf32>
    %cst = arith.constant dense<0.000000e+00> : vector<24x128xf32>
    %2 = tpu.matmul %0, %1, %cst {dimension_numbers = #tpu.dot_dimension_numbers<[1], [0], [0], [1], [0, 0, 1, 1], [], []>} : vector<24x300xf32>, vector<300x128xf32>, vector<24x128xf32> -> vector<24x128xf32>
    %c0_3 = arith.constant 0 : index
    %c0_4 = arith.constant 0 : index
    %3 = vector.load %arg3[%c0_3, %c0_4] : memref<1x128xf32, #tpu.memory_space<vmem>>, vector<1x128xf32>
    %4 = vector.broadcast %3 : vector<1x128xf32> to vector<24x128xf32>
    %5 = arith.addf %2, %4 : vector<24x128xf32>
    %c0_5 = arith.constant 0 : index
    %c0_6 = arith.constant 0 : index
    %6 = vector.load %arg4[%c0_5, %c0_6] : memref<24x128xf32, #tpu.memory_space<vmem>>, vector<24x128xf32>
    tpu.vector_store %arg4[%c0_5, %c0_6], %5 {strides = array<i32>} : memref<24x128xf32, #tpu.memory_space<vmem>>, vector<24x128xf32>,
    return
  }
  func.func @transform_0(%arg0: i32) -> (i32, i32) {
    %c0_i32 = arith.constant 0 : i32
    %c0_i32_0 = arith.constant 0 : i32
    return %arg0, %c0_i32 : i32, i32
  }
  func.func @transform_1(%arg0: i32) -> (i32, i32) {
    %c0_i32 = arith.constant 0 : i32
    %c0_i32_0 = arith.constant 0 : i32
    %c0_i32_1 = arith.constant 0 : i32
    return %c0_i32, %c0_i32_0 : i32, i32
  }
  func.func @transform_2(%arg0: i32) -> (i32, i32) {
    %c0_i32 = arith.constant 0 : i32
    %c0_i32_0 = arith.constant 0 : i32
    %c0_i32_1 = arith.constant 0 : i32
    return %c0_i32, %c0_i32_0 : i32, i32
  }
  func.func @transform_3(%arg0: i32) -> (i32, i32) {
    %c0_i32 = arith.constant 0 : i32
    %c0_i32_0 = arith.constant 0 : i32
    return %arg0, %c0_i32 : i32, i32
  }
}

</mosaic_0001>

<bundles_post_ra>
// kernel: pano_entity_knowledge.1
= control target key start
LH: loop header
LB: loop body
LE: loop exit
PB: predicated region body
PF: predicated region fallthrough
CT: control target
= control target key end

     0   :  { %v411_v7 = vmov 0.0|0.0   ;;  %vm412_vm0 = vmmov 0   ;;  %v413_v13 = vmov 0.0   ;;  %vm79_vm1 = vcmask 1043456   ;;  %s603_s0 = inlined_call_operand.vmem [shape: f32[24,300], index: 0, kind: input, shape index: {}]   ;;  %s604_s1 = inlined_call_operand.vmem [shape: f32[300,128], index: 1, kind: input, shape index: {}]   ;;  %s605_s2 = inlined_call_operand.vmem [shape: f32[1,128], index: 2, kind: input, shape index: {}]   ;;  %s606_s3 = inlined_call_operand.hbm [shape: f32[24,128], index: 3, kind: output, shape index: {}]  }
   0x1   :  { %v40_v0 = vld [vmem:[%s604_s1 + $0x80] sm:$0xff]  ;;  %v41_v1 = vld [vmem:[%s604_s1 + $0x88] sm:$0xff]  ;;  %v42_v5 = vld [vmem:[%s604_s1 + $0x90] sm:$0xff]  ;;  %370 = vmatprep.subr.bf16.mxu1 %v411_v7  ;;  %329 = vmatprep.mubr.msk.f32.mxu1 %vm412_vm0, %v413_v13 }
   0x2   :  { %v24_v2 = vld [vmem:[%s604_s1] sm:$0xff]  ;;  %v338_v3 = vpack.c.bf16 %v41_v1, %v40_v0  ;;  %v25_v4 = vld [vmem:[%s604_s1 + $0x8] sm:$0xff]  ;;  %v43_v6 = vld [vmem:[%s604_s1 + $0x98] sm:$0xff] }
   0x3   :  { %v340_v8 = vpack.c.bf16 %v25_v4, %v24_v2  ;;  %v342_v9 = vpack.c.bf16 %v43_v6, %v42_v5  ;;  %v26_v10 = vld [vmem:[%s604_s1 + $0x10] sm:$0xff]  ;;  %v27_v11 = vld [vmem:[%s604_s1 + $0x18] sm:$0xff]  ;;  %v44_v12 = vld [vmem:[%s604_s1 + $0xa0] sm:$0xff] }
   0x4   :  { %339 = vmatprep.subr.bf16.mxu0 %v338_v3  ;;  %v45_v14 = vld [vmem:[%s604_s1 + $0xa8] sm:$0xff]  ;;  %v344_v15 = vpack.c.bf16 %v27_v11, %v26_v10  ;;  %v28_v17 = vld [vmem:[%s604_s1 + $0x20] sm:$0xff]  ;;  %v46_v19 = vld [vmem:[%s604_s1 + $0xb0] sm:$0xff] }
   0x5   :  { %341 = vmatpush3.bf16.msra.mxu0 %v340_v8  ;;  %v346_v16 = vpack.c.bf16 %v45_v14, %v44_v12  ;;  %v29_v18 = vld [vmem:[%s604_s1 + $0x28] sm:$0xff]  ;;  %v47_v20 = vld [vmem:[%s604_s1 + $0xb8] sm:$0xff]  ;;  %v30_v22 = vld [vmem:[%s604_s1 + $0x30] sm:$0xff] }
   0x6   :  { %343 = vmatprep.subr.bf16.mxu0 %v342_v9  ;;  %v348_v21 = vpack.c.bf16 %v29_v18, %v28_v17  ;;  %v350_v23 = vpack.c.bf16 %v47_v20, %v46_v19  ;;  %v31_v24 = vld [vmem:[%s604_s1 + $0x38] sm:$0xff]  ;;  %v56_v25 = vld [vmem:[%s604_s1 + $0x100] sm:$0xff]  ;;  %v57_v26 = vld [vmem:[%s604_s1 + $0x108] sm:$0xff] }
   0x7   :  { %v48_v27 = vld [vmem:[%s604_s1 + $0xc0] sm:$0xff]  ;;  %v49_v28 = vld [vmem:[%s604_s1 + $0xc8] sm:$0xff]  ;;  %v371_v29 = vpack.c.bf16 %v57_v26, %v56_v25  ;;  %v58_v30 = vld [vmem:[%s604_s1 + $0x110] sm:$0xff]  ;;  %v352_v32 = vpack.c.bf16 %v31_v24, %v30_v22 }
   0x8   :  { %v59_v31 = vld [vmem:[%s604_s1 + $0x118] sm:$0xff]  ;;  %v32_v33 = vld [vmem:[%s604_s1 + $0x40] sm:$0xff]  ;;  %v16_v35 = vld [vmem:[%s603_s0 + $0x8] sm:$0xff]  ;;  %v354_v36 = vpack.c.bf16 %v49_v28, %v48_v27 }
   0x9   :  { %345 = vmatpush3.bf16.msra.mxu0 %v344_v15  ;;  %372 = vmatpush3.bf16.msra.mxu1 %v371_v29  ;;  %v374_v34 = vpack.c.bf16 %v59_v31, %v58_v30  ;;  %v33_v37 = vld [vmem:[%s604_s1 + $0x48] sm:$0xff]  ;;  %v60_v38 = vld [vmem:[%s604_s1 + $0x120] sm:$0xff]  ;;  %v50_v40 = vld [vmem:[%s604_s1 + $0xd0] sm:$0xff] }
   0xa   :  { %347 = vmatprep.subr.bf16.mxu0 %v346_v16  ;;  %373 = vmatprep.subr.bf16.mxu1 %v411_v7  ;;  %v61_v39 = vld [vmem:[%s604_s1 + $0x128] sm:$0xf]  ;;  %v51_v41 = vld [vmem:[%s604_s1 + $0xd8] sm:$0xff]  ;;  %v356_v42 = vpack.c.bf16 %v33_v37, %v32_v33 }
   0xb   :  { %147 = vmatprep.mubr.f32.mxu0 %v16_v35  ;;  %v377_v43 = vpack.c.bf16 %v61_v39, %v60_v38 }
   0xd   :  { %349 = vmatpush3.bf16.msra.mxu0 %v348_v21  ;;  %375 = vmatpush3.bf16.msra.mxu1 %v374_v34 }
   0xe   :  { %351 = vmatprep.subr.bf16.mxu0 %v350_v23 }
  0x11   :  { %353 = vmatpush3.bf16.msra.mxu0 %v352_v32 }
  0x12   :  { %8 = vsyncpa [#allocation3], 0  ;;  %355 = vmatprep.subr.bf16.mxu0 %v354_v36  ;;  %v358_v44 = vpack.c.bf16 %v51_v41, %v50_v40  ;;  %v34_v45 = vld [vmem:[%s604_s1 + $0x50] sm:$0xff]  ;;  %v35_v46 = vld [vmem:[%s604_s1 + $0x58] sm:$0xff]  ;;  %376 = vmatprep.subr.bf16.mxu1 %v411_v7  ;;  %vm414_vm2 = vmmov 1   ;;  %vm69_vm4 = vcmask 359424  }
  0x13   :  { %vm378_vm3 = vmpackc.low %vm79_vm1, %vm414_vm2  ;;  %v52_v47 = vld [vmem:[%s604_s1 + $0xe0] sm:$0xff]  ;;  %v53_v48 = vld [vmem:[%s604_s1 + $0xe8] sm:$0xff]  ;;  %v360_v49 = vpack.c.bf16 %v35_v46, %v34_v45 }
  0x14   :  { %379 = vmatpush3.bf16.msk.msra.mxu1 %vm378_vm3, %v377_v43  ;;  %v17_v50 = vld [vmem:[%s603_s0 + $0x10] sm:$0xff]  ;;  %v362_v51 = vpack.c.bf16 %v53_v48, %v52_v47  ;;  %v36_v52 = vld [vmem:[%s604_s1 + $0x60] sm:$0xff]  ;;  %v37_v53 = vld [vmem:[%s604_s1 + $0x68] sm:$0xff] }
  0x15   :  { %357 = vmatpush3.bf16.msra.mxu0 %v356_v42  ;;  %v54_v54 = vld [vmem:[%s604_s1 + $0xf0] sm:$0xff]  ;;  %v55_v55 = vld [vmem:[%s604_s1 + $0xf8] sm:$0xff]  ;;  %v364_v56 = vpack.c.bf16 %v37_v53, %v36_v52  ;;  %v20_v57 = vld [vmem:[%s603_s0 + $0x28] sm:$0xff] }
  0x16   :  { %359 = vmatprep.subr.bf16.mxu0 %v358_v44  ;;  %v366_v58 = vpack.c.bf16 %v55_v55, %v54_v54  ;;  %v38_v59 = vld [vmem:[%s604_s1 + $0x70] sm:$0xff]  ;;  %v39_v60 = vld [vmem:[%s604_s1 + $0x78] sm:$0xff]  ;;  %v23_v62 = vld [vmem:[%s603_s0 + $0x40] sm:$0xff] }
  0x17   :  { %330 = vmatmul.mubr.msk.f32.vlgmr.msra.gmra.mrb[0].mxu1 %vm69_vm4, %v17_v50  ;;  %v368_v61 = vpack.c.bf16 %v39_v60, %v38_v59  ;;  %v15_v63 = vld [vmem:[%s603_s0] sm:$0xff]  ;;  %v18_v1 = vld [vmem:[%s603_s0 + $0x18] sm:$0xff]  ;;  %v21_v3 = vld [vmem:[%s603_s0 + $0x30] sm:$0xff] }
  0x18   :  { %332 = vmatprep.mubr.msk.f32.mxu1 %vm412_vm0, %v413_v13  ;;  %v19_v0 = vld [vmem:[%s603_s0 + $0x20] sm:$0xff]  ;;  %v22_v2 = vld [vmem:[%s603_s0 + $0x38] sm:$0xff]  ;;  %s415_s0 = smov [#allocation2]  }
  0x19   :  { %361 = vmatpush3.bf16.msra.mxu0 %v360_v49  ;;  %v262_v12 = vld [vmem:[%s605_s2] ss:$0 sm:$0xff]  ;;  %s251_s26 = sshll.u32 %s415_s0, 4  ;;  %s252_s26 = int_to_ptr.vmem [resolvable:$true] %s251_s26 }
  0x1a   :  { %363 = vmatprep.subr.bf16.mxu0 %v362_v51  ;;  %s387_s2 = scalar_lea.vmem %s252_s26, 384  ;;  %p392_p1 = scmp.lt.s32.totalorder %s252_s26, %s252_s26 }
  0x1b   :  { %333 = vmatmul.mubr.msk.f32.gmra.mrb[2].mxu1 %vm69_vm4, %v20_v57  ;;  %p388_p0 = scmp.ne.s32.totalorder %s252_s26, %s387_s2  ;;  %p393_p2 = scmp.lt.s32.totalorder %s387_s2, %s387_s2 }
  0x1c   :  { %335 = vmatprep.mubr.msk.f32.mxu1 %vm412_vm0, %v413_v13 }
  0x1d   :  { %365 = vmatpush3.bf16.msra.mxu0 %v364_v56  ;;  %p394_p3 = por %p393_p2, %p392_p1 }
  0x1e   :  { %367 = vmatprep.subr.bf16.mxu0 %v366_v58 }
  0x1f   :  { %336 = vmatmul.mubr.msk.f32.gmra.mrb[4].mxu1 %vm69_vm4, %v23_v62  ;;  %p395_p4 = pnand %p394_p3, %p388_p0 }
  0x21   :  { %369 = vmatpush3.bf16.msra.mxu0 %v368_v61 }
  0x24   :  { %148 = vmatmul.mubr.f32.vlgmr.msra.gmra.mrb[0].mxu0 %v15_v63 }
  0x25   :  { %152 = vmatprep.mubr.f32.mxu0 %v19_v0 }
  0x28   :  { %153 = vmatmul.mubr.f32.gmra.mrb[2].mxu0 %v18_v1 }
  0x29   :  { %157 = vmatprep.mubr.f32.mxu0 %v22_v2 }
  0x2c   :  { %158 = vmatmul.mubr.f32.gmra.mrb[4].mxu0 %v21_v3 }
  0xea   :  { %v229_v4 = vpop.f32.mrb[0].mxu1 }
  0xeb   :  { %v331_v5 = vpop.f32.mrb[1].mxu1 }
  0xee   :  { %v234_v6 = vpop.f32.mrb[2].mxu1 }
  0xef   :  { %v334_v7 = vpop.f32.mrb[3].mxu1 }
  0xf2   :  { %v239_v8 = vpop.f32.mrb[4].mxu1 }
  0xf3   :  { %v337_v9 = vpop.f32.mrb[5].mxu1 }
  0xf7   :  { %v299_v10 = vpop.f32.mrb[0].mxu0 }
  0xf8   :  { %v300_v11 = vpop.f32.mrb[1].mxu0 }
  0xf9   :  { %v301_v13 = vadd.f32 %v300_v11, %v299_v10 }
  0xfb   :  { %v302_v14 = vpop.f32.mrb[2].mxu0  ;;  %v150_v15 = vadd.f32 %v301_v13, %v262_v12 }
  0xfc   :  { %v303_v16 = vpop.f32.mrb[3].mxu0 }
  0xfd   :  { %v230_v17 = vadd.f32 %v229_v4, %v150_v15  ;;  %v304_v18 = vadd.f32 %v303_v16, %v302_v14 }
  0xff   :  { %243 = vst [vmem:[#allocation2] sm:$0xff] %v230_v17  ;;  %v305_v19 = vpop.f32.mrb[4].mxu0  ;;  %v155_v20 = vadd.f32 %v304_v18, %v262_v12 }
 0x100   :  { %v306_v21 = vpop.f32.mrb[5].mxu0 }
 0x101   :  { %v235_v22 = vadd.f32 %v234_v6, %v155_v20  ;;  %v307_v23 = vadd.f32 %v306_v21, %v305_v19 }
 0x103   :  { %244 = vst [vmem:[#allocation2 + $0x8] sm:$0xff] %v235_v22  ;;  %v160_v24 = vadd.f32 %v307_v23, %v262_v12 }
 0x105   :  { %v240_v25 = vadd.f32 %v239_v8, %v160_v24 }
 0x107   :  { %245 = vst [vmem:[#allocation2 + $0x10] sm:$0xff] %v240_v25 }
 0x108   :  { %398 = shalt.err (!%p395_p4)
}
 0x109   :  { %s399_s29 = scalar_lea.hbm %s606_s3, 384 }
 0x10a   :  { %p400_p5 = scmp.ne.s32.totalorder %s606_s3, %s399_s29  ;;  %p403_p6 = scmp.lt.u32.totalorder %s399_s29, %s606_s3 }
 0x10c   :  { %p405_p7 = pnand %p403_p6, %p400_p5 }
 0x10e   :  { %408 = shalt.err (!%p405_p7)
}
 0x10f   :  { %s416_s7 = smov 128   ;;  %s417_s8 = smov 8  }
 0x110   :  { %257 = dma.vmem_to_hbm [thread:$0]  %s252_s26, 384, %s606_s3, [#allocation3], %s416_s7, %s416_s7, %s417_s8  }
 0x111   :  { %409 = dma.done.wait [#allocation3], 384  }
 0x112   :  { %410 = vsyncadd [#allocation3], 4294966912 }
 0x113   :  { %261 = vsyncpa [#allocation3], 1 }

</bundles_post_ra>
